<compile_context>
chip_gen: v7x
topology: tpu7x:2x2x1
jax: 0.10.0
libtpu: 0.0.40
codegen_flags: <defaults>
</compile_context>

<pallas_src>
import math

import jax
import jax.numpy as jnp
from jax.experimental import pallas as pl
from jax.experimental.pallas import tpu as pltpu


def _get_alibi_slopes(n):
    """Deterministic alibi slopes (same formula as the PyTorch module)."""

    def get_slopes_power_of_2(n):
        start = 2 ** (-(2 ** (-(math.log2(n) - 3))))
        ratio = start
        return [start * ratio ** i for i in range(n)]

    if math.log2(n).is_integer():
        return get_slopes_power_of_2(n)
    else:
        closest_power_of_2 = 2 ** math.floor(math.log2(n))
        return (
            get_slopes_power_of_2(closest_power_of_2)
            + _get_alibi_slopes(2 * closest_power_of_2)[0::2][: n - closest_power_of_2]
        )


def _alibi_kernel(slopes_ref, out_ref):
    # slopes_ref: SMEM (num_heads,) float32, scalar-prefetched once.
    # out_ref:    VMEM (Hb, ts, tk) output block for (head block, seq tile, key tile).
    hb, ts, tk = out_ref.shape
    h0 = pl.program_id(0) * hb          # absolute first head of this block
    i0 = pl.program_id(1) * ts          # absolute query offset of this tile
    j0 = pl.program_id(2) * tk          # absolute key offset of this tile

    rows = jax.lax.broadcasted_iota(jnp.int32, (ts, tk), 0)
    cols = jax.lax.broadcasted_iota(jnp.int32, (ts, tk), 1)
    rel = jnp.abs((cols - rows) + (j0 - i0)).astype(jnp.float32)   # |j - i|

    # Static unroll over the (small) head block: reuse rel, one scalar SMEM
    # read + one scalar*tile multiply + one store per head.
    for hh in range(hb):
        out_ref[hh, :, :] = ((-slopes_ref[h0 + hh]) * rel).astype(out_ref.dtype)


_BLOCK_BUDGET_BYTES = 4 * 1024 * 1024   # per output block (Pallas double-buffers it)
_MAX_KEY_TILE = 4096                    # lane-tiling fallback for very long keys


def _select_tiles(num_heads, seq_length, key_length, itemsize,
                  seq_tile=None, key_tile=None, heads_per_block=None):
    sublane = max(8, 32 // itemsize)    # 8 for fp32, 16 for bf16

    # Key tile: prefer full key width -> contiguous HBM writeback per row range.
    if key_tile is not None:
        tk = key_tile
    elif key_length * itemsize * sublane <= _BLOCK_BUDGET_BYTES:
        tk = key_length
    else:
        tk = _MAX_KEY_TILE

    # Seq tile: as many rows as fit the block budget (full dim when small).
    if seq_tile is not None:
        ts = seq_tile
    else:
        max_rows = max(sublane, _BLOCK_BUDGET_BYTES // (tk * itemsize))
        if seq_length <= max_rows:
            ts = seq_length             # full-dim block is always layout-legal
        else:
            ts = (max_rows // sublane) * sublane

    # Heads per block: fold heads when there is VMEM slack (amortizes the
    # ~0.35us per-grid-step overhead and reuses |j-i| across heads).
    if heads_per_block is not None:
        hb = heads_per_block
        assert num_heads % hb == 0, "heads_per_block must divide num_heads"
    else:
        slack = max(1, _BLOCK_BUDGET_BYTES // (ts * tk * itemsize))
        hb = 1
        for d in range(1, num_heads + 1):
            if num_heads % d == 0 and d <= slack:
                hb = d
    return hb, ts, tk


def alibi_position_bias(
    num_heads,
    seq_length,
    key_length,
    slopes=None,
    *,
    seq_tile=None,
    key_tile=None,
    heads_per_block=None,
    out_dtype=jnp.float32,      # pass jnp.bfloat16 to halve HBM bytes written
):
    """Returns alibi position bias of shape [num_heads, seq_length, key_length]."""
    if slopes is None:
        slopes = jnp.asarray(_get_alibi_slopes(num_heads), dtype=jnp.float32)
    slopes = jnp.ravel(slopes).astype(jnp.float32)  # (num_heads,)

    itemsize = jnp.dtype(out_dtype).itemsize
    hb, ts, tk = _select_tiles(
        num_heads, seq_length, key_length, itemsize,
        seq_tile=seq_tile, key_tile=key_tile, heads_per_block=heads_per_block,
    )

    grid = (num_heads // hb, pl.cdiv(seq_length, ts), pl.cdiv(key_length, tk))
    out_shape = jax.ShapeDtypeStruct((num_heads, seq_length, key_length), out_dtype)

    grid_spec = pltpu.PrefetchScalarGridSpec(
        num_scalar_prefetch=1,                    # slopes vector -> SMEM, once
        grid=grid,
        in_specs=[],
        out_specs=pl.BlockSpec(
            (hb, ts, tk),
            lambda h, si, kj, slopes_ref: (h, si, kj),
        ),
        scratch_shapes=[],
    )

    cost = pl.CostEstimate(
        flops=2 * num_heads * seq_length * key_length,
        transcendentals=0,
        bytes_accessed=num_heads * seq_length * key_length * itemsize
        + num_heads * 4,
    )

    return pl.pallas_call(
        _alibi_kernel,
        out_shape=out_shape,
        grid_spec=grid_spec,
        cost_estimate=cost,
        compiler_params=pltpu.CompilerParams(
            # Every grid step writes a disjoint output block and carries no
            # state -> all axes shardable across TensorCores.
            dimension_semantics=("parallel", "parallel", "parallel"),
            # v5e defaults to a 16 MiB scoped-VMEM limit; raise it explicitly
            # so 4 MiB double-buffered blocks always compile.
            vmem_limit_bytes=32 * 1024 * 1024,
        ),
    )(slopes)


class AlibiPositionEmbeddingLayer:
    """Thin JAX wrapper mirroring the PyTorch module's forward."""

    def __init__(self, num_heads, slopes=None, alibi_trainable_slopes=False):
        assert slopes is None, "Customized slope is not supported yet."
        # TODO(synk): trainable slopes (xavier-init parameter) not translated.
        self.num_heads = num_heads
        self.slopes = jnp.asarray(_get_alibi_slopes(num_heads), dtype=jnp.float32)

    def __call__(self, seq_length, key_length, past_kv=None, out_dtype=jnp.float32):
        bias = alibi_position_bias(
            self.num_heads, seq_length, key_length, self.slopes, out_dtype=out_dtype
        )
        # TODO(synk): past_kv slicing path of the original module not translated.
        return bias


def _reference(num_heads, seq_length, key_length):
    slopes = jnp.asarray(_get_alibi_slopes(num_heads), dtype=jnp.float32).reshape(
        num_heads, 1, 1
    )
    ctx = jnp.arange(seq_length, dtype=jnp.int32)[:, None]
    mem = jnp.arange(key_length, dtype=jnp.int32)[None, :]
    rel = jnp.abs(mem - ctx).astype(jnp.float32)[None, :, :]
    return -slopes * rel


if __name__ == "__main__":
    # Deterministic setup (key unused for values; alibi slopes are analytic).
    _ = jax.random.PRNGKey(0)

    # Case 1: small shapes -> single full-dim block, all heads folded.
    num_heads, seq_length, key_length = 4, 8, 16
    layer = AlibiPositionEmbeddingLayer(num_heads)
    out = jax.block_until_ready(layer(seq_length, key_length))
    ref = _reference(num_heads, seq_length, key_length)
    assert out.shape == (num_heads, seq_length, key_length)
    assert out.dtype == jnp.float32
    assert jnp.allclose(out, ref, atol=1e-6, rtol=1e-6)

    # Case 2: forces the multi-tile path (grid 3 x 4 x 3, head blocks of 2,
    # non-power-of-2 head count) to exercise tiling and the per-tile |j-i|.
    nh2, s2, k2 = 6, 32, 384
    out2 = jax.block_until_ready(
        alibi_position_bias(nh2, s2, k2, seq_tile=8, key_tile=128, heads_per_block=2)
    )
    ref2 = _reference(nh2, s2, k2)
    assert jnp.allclose(out2, ref2, atol=1e-6, rtol=1e-6)

    # Case 3: bf16 output (halves HBM bytes written); math stays fp32, cast on
    # store, so tolerance is loosened to bf16 resolution.
    nh3, s3, k3 = 4, 64, 128
    out3 = jax.block_until_ready(
        alibi_position_bias(nh3, s3, k3, out_dtype=jnp.bfloat16)
    )
    ref3 = _reference(nh3, s3, k3)
    assert out3.dtype == jnp.bfloat16
    assert jnp.allclose(out3.astype(jnp.float32), ref3, atol=1e-2, rtol=1e-2)

    print("KERNEL_OK")
</pallas_src>

<mosaic_0001>
module attributes {stable_mosaic.version = 11 : i64} {
  func.func @_alibi_kernel(%arg0: i32, %arg1: i32, %arg2: i32, %arg3: memref<4xf32, #tpu.memory_space<smem>>, %arg4: memref<4x8x16xf32, #tpu.memory_space<vmem>>) attributes {dimension_semantics = [#tpu.dimension_semantics<parallel>, #tpu.dimension_semantics<parallel>, #tpu.dimension_semantics<parallel>], iteration_bounds = array<i64: 1, 1, 1>, scalar_prefetch = 1 : i64, scratch_operands = 0 : i64, tpu.core_type = #tpu.core_type<tc>, window_params = [{transform_indices = @transform_0, window_bounds = array<i64: 4, 8, 16>}]} {
    %c4_i32 = arith.constant 4 : i32
    %0 = arith.muli %arg0, %c4_i32 : i32
    %c8_i32 = arith.constant 8 : i32
    %1 = arith.muli %arg1, %c8_i32 : i32
    %c16_i32 = arith.constant 16 : i32
    %2 = arith.muli %arg2, %c16_i32 : i32
    %3 = tpu.iota {dimensions = array<i32: 0>} : vector<8x16xi32>
    %4 = tpu.iota {dimensions = array<i32: 1>} : vector<8x16xi32>
    %5 = arith.subi %4, %3 : vector<8x16xi32>
    %6 = arith.subi %2, %1 : i32
    %7 = vector.broadcast %6 : i32 to vector<8x16xi32>
    %8 = arith.addi %5, %7 : vector<8x16xi32>
    %9 = math.absi %8 : vector<8x16xi32>
    %10 = arith.sitofp %9 : vector<8x16xi32> to vector<8x16xf32>
    %c0_i32 = arith.constant 0 : i32
    %11 = arith.addi %0, %c0_i32 : i32
    %12 = arith.index_cast %11 : i32 to index
    %13 = memref.load %arg3[%12] : memref<4xf32, #tpu.memory_space<smem>>
    %cst = arith.constant 0.000000e+00 : f32
    %14 = arith.subf %cst, %13 : f32
    %15 = vector.broadcast %14 : f32 to vector<8x16xf32>
    %16 = arith.mulf %15, %10 : vector<8x16xf32>
    %c0 = arith.constant 0 : index
    %c0_0 = arith.constant 0 : index
    %c0_1 = arith.constant 0 : index
    %17 = vector.load %arg4[%c0, %c0_0, %c0_1] : memref<4x8x16xf32, #tpu.memory_space<vmem>>, vector<1x8x16xf32>
    %18 = vector.shape_cast %17 : vector<1x8x16xf32> to vector<8x16xf32>
    %19 = vector.shape_cast %16 : vector<8x16xf32> to vector<1x8x16xf32>
    tpu.vector_store %arg4[%c0, %c0_0, %c0_1], %19 {strides = array<i32>} : memref<4x8x16xf32, #tpu.memory_space<vmem>>, vector<1x8x16xf32>,
    %c1_i32 = arith.constant 1 : i32
    %20 = arith.addi %0, %c1_i32 : i32
    %21 = arith.index_cast %20 : i32 to index
    %22 = memref.load %arg3[%21] : memref<4xf32, #tpu.memory_space<smem>>
    %cst_2 = arith.constant 0.000000e+00 : f32
    %23 = arith.subf %cst_2, %22 : f32
    %24 = vector.broadcast %23 : f32 to vector<8x16xf32>
    %25 = arith.mulf %24, %10 : vector<8x16xf32>
    %c1 = arith.constant 1 : index
    %c0_3 = arith.constant 0 : index
    %c0_4 = arith.constant 0 : index
    %26 = vector.load %arg4[%c1, %c0_3, %c0_4] : memref<4x8x16xf32, #tpu.memory_space<vmem>>, vector<1x8x16xf32>
    %27 = vector.shape_cast %26 : vector<1x8x16xf32> to vector<8x16xf32>
    %28 = vector.shape_cast %25 : vector<8x16xf32> to vector<1x8x16xf32>
    tpu.vector_store %arg4[%c1, %c0_3, %c0_4], %28 {strides = array<i32>} : memref<4x8x16xf32, #tpu.memory_space<vmem>>, vector<1x8x16xf32>,
    %c2_i32 = arith.constant 2 : i32
    %29 = arith.addi %0, %c2_i32 : i32
    %30 = arith.index_cast %29 : i32 to index
    %31 = memref.load %arg3[%30] : memref<4xf32, #tpu.memory_space<smem>>
    %cst_5 = arith.constant 0.000000e+00 : f32
    %32 = arith.subf %cst_5, %31 : f32
    %33 = vector.broadcast %32 : f32 to vector<8x16xf32>
    %34 = arith.mulf %33, %10 : vector<8x16xf32>
    %c2 = arith.constant 2 : index
    %c0_6 = arith.constant 0 : index
    %c0_7 = arith.constant 0 : index
    %35 = vector.load %arg4[%c2, %c0_6, %c0_7] : memref<4x8x16xf32, #tpu.memory_space<vmem>>, vector<1x8x16xf32>
    %36 = vector.shape_cast %35 : vector<1x8x16xf32> to vector<8x16xf32>
    %37 = vector.shape_cast %34 : vector<8x16xf32> to vector<1x8x16xf32>
    tpu.vector_store %arg4[%c2, %c0_6, %c0_7], %37 {strides = array<i32>} : memref<4x8x16xf32, #tpu.memory_space<vmem>>, vector<1x8x16xf32>,
    %c3_i32 = arith.constant 3 : i32
    %38 = arith.addi %0, %c3_i32 : i32
    %39 = arith.index_cast %38 : i32 to index
    %40 = memref.load %arg3[%39] : memref<4xf32, #tpu.memory_space<smem>>
    %cst_8 = arith.constant 0.000000e+00 : f32
    %41 = arith.subf %cst_8, %40 : f32
    %42 = vector.broadcast %41 : f32 to vector<8x16xf32>
    %43 = arith.mulf %42, %10 : vector<8x16xf32>
    %c3 = arith.constant 3 : index
    %c0_9 = arith.constant 0 : index
    %c0_10 = arith.constant 0 : index
    %44 = vector.load %arg4[%c3, %c0_9, %c0_10] : memref<4x8x16xf32, #tpu.memory_space<vmem>>, vector<1x8x16xf32>
    %45 = vector.shape_cast %44 : vector<1x8x16xf32> to vector<8x16xf32>
    %46 = vector.shape_cast %43 : vector<8x16xf32> to vector<1x8x16xf32>
    tpu.vector_store %arg4[%c3, %c0_9, %c0_10], %46 {strides = array<i32>} : memref<4x8x16xf32, #tpu.memory_space<vmem>>, vector<1x8x16xf32>,
    return
  }
  func.func @transform_0(%arg0: i32, %arg1: i32, %arg2: i32, %arg3: memref<4xf32, #tpu.memory_space<smem>>) -> (i32, i32, i32) {
    %c0_i32 = arith.constant 0 : i32
    return %arg0, %arg1, %arg2 : i32, i32, i32
  }
}

</mosaic_0001>

<bundles_post_ra>
// kernel: tpu_custom_call.1
= control target key start
LH: loop header
LB: loop body
LE: loop exit
PB: predicated region body
PF: predicated region fallthrough
CT: control target
= control target key end

     0   :  { %s151_s0 = inlined_call_operand.hbm [shape: f32[4], index: 0, kind: input, shape index: {}]   ;;  %s152_s1 = inlined_call_operand.hbm [shape: f32[4,8,16], index: 1, kind: output, shape index: {}]  }
   0x1   :  { %s77_s8 = scalar_lea.hbm %s151_s0, 16 }
   0x2   :  { %p78_p0 = scmp.ne.s32.totalorder %s151_s0, %s77_s8  ;;  %p81_p1 = scmp.lt.u32.totalorder %s77_s8, %s151_s0 }
   0x4   :  { %p83_p2 = pnand %p81_p1, %p78_p0 }
   0x6   :  { %86 = shalt.err (!%p83_p2)  }
   0x7   :  { %s113_s13 = smov [#allocation3]  }
   0x8   :  { %7 = dma.hbm_to_smem %s151_s0, 16, %s113_s13, [#allocation2] }
   0x9   :  { %109 = dma.done.wait [#allocation2], 16 }
   0xa   :  { %110 = vsyncadd [#allocation2], 4294967280 }
   0xb   :  { %9 = sfence }
   0xc   :  { %v14_v0 = vlaneseq  ;;  %s26_s16 = sld [smem:[#allocation3]]  ;;  %s70_s17 = sld [smem:[#allocation3 + $0x1]] }
   0xd   :  { %s71_s18 = sld [smem:[#allocation3 + $0x2]]  ;;  %s72_s19 = sld [smem:[#allocation3 + $0x3]] }
   0xe   :  { %10 = vsyncpa [#allocation5], 0  ;;  %v15_v1 = vshrl.u32 %v14_v0, 7  ;;  %v17_v2 = vand.u32 127, %v14_v0  ;;  %s114_s23 = smov [#allocation4]   ;;  %vm30_vm0 = vcmask 130048  }
   0xf   :  { %s58_s24 = sshll.u32 %s114_s23, 4  ;;  %s59_s24 = int_to_ptr.vmem [resolvable:$true] %s58_s24 }
  0x10   :  { %v18_v3 = vsub.s32 %v17_v2, %v15_v1  ;;  %s87_s25 = scalar_lea.vmem %s59_s24, 512  ;;  %p92_p4 = scmp.lt.s32.totalorder %s59_s24, %s59_s24 }
  0x11   :  { %p88_p3 = scmp.ne.s32.totalorder %s59_s24, %s87_s25  ;;  %p93_p5 = scmp.lt.s32.totalorder %s87_s25, %s87_s25 }
  0x12   :  { %v23_v4 = vsub.s32 0, %v18_v3  ;;  %s27_s20 = ssub.f32 0.0, %s26_s16 }
  0x13   :  { %s34_s21 = ssub.f32 0.0, %s70_s17  ;;  %p94_p6 = por %p93_p5, %p92_p4 }
  0x14   :  { %v69_v5 = vmin.u32 %v23_v4, %v18_v3  ;;  %s41_s22 = ssub.f32 0.0, %s71_s18  ;;  %v28_v6 = vstv %s27_s20 }
  0x15   :  { %v35_v7 = vstv %s34_s21  ;;  %s48_s0 = ssub.f32 0.0, %s72_s19  ;;  %p95_p7 = pnand %p94_p6, %p88_p3 }
  0x16   :  { %v25_v8 = vcvt.s32.f32 %v69_v5  ;;  %v42_v9 = vstv %s41_s22 }
  0x17   :  { %v49_v10 = vstv %s48_s0 }
  0x18   :  { %v29_v11 = vmul.f32 %v28_v6, %v25_v8  ;;  %v36_v12 = vmul.f32 %v35_v7, %v25_v8  ;;  %v43_v13 = vmul.f32 %v42_v9, %v25_v8  ;;  %v50_v14 = vmul.f32 %v49_v10, %v25_v8 }
  0x1a   :  { %31 = vst.msk [vmem:[#allocation4] sm:$0xff] %vm30_vm0, %v29_v11  ;;  %38 = vst.msk [vmem:[#allocation4 + $0x8] sm:$0xff] %vm30_vm0, %v36_v12 }
  0x1b   :  { %45 = vst.msk [vmem:[#allocation4 + $0x10] sm:$0xff] %vm30_vm0, %v43_v13  ;;  %52 = vst.msk [vmem:[#allocation4 + $0x18] sm:$0xff] %vm30_vm0, %v50_v14 }
  0x1c   :  { %98 = shalt.err (!%p95_p7)
}
  0x1d   :  { %s99_s28 = scalar_lea.hbm %s152_s1, 512 }
  0x1e   :  { %p100_p8 = scmp.ne.s32.totalorder %s152_s1, %s99_s28  ;;  %p103_p9 = scmp.lt.u32.totalorder %s99_s28, %s152_s1 }
  0x20   :  { %p105_p10 = pnand %p103_p9, %p100_p8 }
  0x22   :  { %108 = shalt.err (!%p105_p10)
}
  0x23   :  { %s115_s4 = smov 128   ;;  %s116_s5 = smov 8  }
  0x24   :  { %64 = dma.vmem_to_hbm [thread:$0]  %s59_s24, 512, %s152_s1, [#allocation5], %s115_s4, %s115_s4, %s116_s5  }
  0x25   :  { %111 = dma.done.wait [#allocation5], 512  }
  0x26   :  { %112 = vsyncadd [#allocation5], 4294966784 }
  0x27   :  { %68 = vsyncpa [#allocation5], 1 }

</bundles_post_ra>
